<compile_context>
chip_gen: v5e
topology: v5e:2x2
jax: 0.10.0
libtpu: 0.0.40
codegen_flags: <defaults>
</compile_context>

<pallas_src>
import numpy as np
import jax
import jax.numpy as jnp
from jax.experimental import pallas as pl
from jax.experimental.pallas import tpu as pltpu


# ----------------------------- Pallas kernels -----------------------------

def _conv_relu_kernel(xp_ref, w_ref, b_ref, o_ref):
    # xp_ref: (1, H+2, (W+2)*Cin) bf16, w_ref: (3, (W+2)*Cin, W*Cout) bf16,
    # b_ref: (1, W*Cout) f32, o_ref: (1, H, W*Cout).
    H = o_ref.shape[1]
    xp = xp_ref[0]                                                   # (H+2, (W+2)*Cin)
    acc = jnp.dot(xp[0:H, :],     w_ref[0], preferred_element_type=jnp.float32)
    acc = acc + jnp.dot(xp[1:H + 1, :], w_ref[1], preferred_element_type=jnp.float32)
    acc = acc + jnp.dot(xp[2:H + 2, :], w_ref[2], preferred_element_type=jnp.float32)
    acc = acc + b_ref[...]                                           # bias in f32
    o_ref[0] = jnp.maximum(acc, 0.0).astype(o_ref.dtype)


def _conv_tanh_kernel(xp_ref, w_ref, b_ref, o_ref):
    H = o_ref.shape[1]
    xp = xp_ref[0]
    acc = jnp.dot(xp[0:H, :],     w_ref[0], preferred_element_type=jnp.float32)
    acc = acc + jnp.dot(xp[1:H + 1, :], w_ref[1], preferred_element_type=jnp.float32)
    acc = acc + jnp.dot(xp[2:H + 2, :], w_ref[2], preferred_element_type=jnp.float32)
    acc = acc + b_ref[...]
    o_ref[0] = jnp.tanh(acc).astype(o_ref.dtype)                     # tanh in f32


def _latent_enc_kernel(h_ref, wc_ref, bc_ref, eps_ref,
                       mu_ref, ls_ref, z_ref, acc_ref):
    # N-tiled reduction:  acc(B,2Z) += h_tile(B,tn) @ w_cat_tile(tn,2Z).
    k = pl.program_id(0)

    @pl.when(k == 0)
    def _():
        acc_ref[...] = jnp.zeros_like(acc_ref)

    acc_ref[...] += jnp.dot(h_ref[...], wc_ref[...],
                            preferred_element_type=jnp.float32)

    @pl.when(k == pl.num_programs(0) - 1)
    def _():
        zdim = eps_ref.shape[1]
        ml = acc_ref[...] + bc_ref[...]                              # (B, 2Z) f32
        mu = ml[:, :zdim]
        ls = ml[:, zdim:]
        mu_ref[...] = mu
        ls_ref[...] = ls
        # torch ref: sigma2 = exp(log_sigma2); z = mu + sigma2 * randn_like(sigma2)
        z_ref[...] = mu + jnp.exp(ls) * eps_ref[...]


def _latent_dec_kernel(z_ref, w_ref, b_ref, o_ref):
    # One N-tile of h_dec = z @ W_zh + b_zh  (lane-dense bf16 output tile).
    hd = jnp.dot(z_ref[...].astype(w_ref.dtype), w_ref[...],
                 preferred_element_type=jnp.float32)
    o_ref[...] = (hd + b_ref[...]).astype(o_ref.dtype)


# ------------------------------ call helpers ------------------------------

def _nbytes(*arrs):
    return int(sum(int(a.size) * int(a.dtype.itemsize) for a in arrs))


def conv3x3(xp2d, wexp, brow, activation, out_dtype):
    """Fused-im2col 3x3 'same' conv.

    xp2d: (B, H+2, (W+2)*Cin) bf16 (spatially padded NHWC, last two dims collapsed)
    wexp: (3, (W+2)*Cin, W*Cout) bf16 banded weights
    brow: (1, W*Cout) f32
    returns (B, H, W*Cout) with the activation fused.
    """
    B, Hp2, K = xp2d.shape
    H = Hp2 - 2
    WCp = wexp.shape[2]
    kernel = _conv_relu_kernel if activation == "relu" else _conv_tanh_kernel
    out_bytes = B * H * WCp * int(np.dtype(out_dtype).itemsize)
    cost = pl.CostEstimate(
        flops=int(2 * 3 * B * H * K * WCp),
        transcendentals=int(B * H * WCp if activation == "tanh" else 0),
        bytes_accessed=_nbytes(xp2d, wexp, brow) + out_bytes)
    return pl.pallas_call(
        kernel,
        out_shape=jax.ShapeDtypeStruct((B, H, WCp), out_dtype),
        grid=(B,),
        in_specs=[pl.BlockSpec((1, Hp2, K), lambda b: (b, 0, 0)),
                  pl.BlockSpec((3, K, WCp), lambda b: (0, 0, 0)),
                  pl.BlockSpec((1, WCp), lambda b: (0, 0))],
        out_specs=pl.BlockSpec((1, H, WCp), lambda b: (b, 0, 0)),
        compiler_params=pltpu.CompilerParams(
            dimension_semantics=("parallel",)),
        cost_estimate=cost,
    )(xp2d, wexp, brow)


def latent_encode(h, w_cat, b_cat, eps, tn=512):
    """h:(B,N) bf16, w_cat:(N,2Z) bf16 -> mu, log_sigma2, z  (each (B,Z) f32)."""
    B, N = h.shape
    Z = eps.shape[1]
    if N % tn:
        tn = N
    cost = pl.CostEstimate(
        flops=int(2 * B * N * 2 * Z + 4 * B * Z),
        transcendentals=int(B * Z),
        bytes_accessed=_nbytes(h, w_cat, b_cat, eps) + 3 * B * Z * 4)
    out_sds = jax.ShapeDtypeStruct((B, Z), jnp.float32)
    return pl.pallas_call(
        _latent_enc_kernel,
        out_shape=(out_sds, out_sds, out_sds),                 # mu, log_sigma2, z
        grid=(N // tn,),
        in_specs=[pl.BlockSpec((B, tn), lambda k: (0, k)),
                  pl.BlockSpec((tn, 2 * Z), lambda k: (k, 0)),
                  pl.BlockSpec((1, 2 * Z), lambda k: (0, 0)),
                  pl.BlockSpec((B, Z), lambda k: (0, 0))],
        out_specs=(pl.BlockSpec((B, Z), lambda k: (0, 0)),
                   pl.BlockSpec((B, Z), lambda k: (0, 0)),
                   pl.BlockSpec((B, Z), lambda k: (0, 0))),
        scratch_shapes=[pltpu.VMEM((B, 2 * Z), jnp.float32)],
        compiler_params=pltpu.CompilerParams(
            dimension_semantics=("arbitrary",),                # N is a reduction axis
            vmem_limit_bytes=32 * 1024 * 1024),
        cost_estimate=cost,
    )(h, w_cat, b_cat, eps)


def latent_decode(z, w_zh, b_zh, tn=512):
    """z:(B,Z) f32, w_zh:(Z,N) bf16 -> h_dec:(B,N) bf16, N-tiled/lane-dense."""
    B, Z = z.shape
    N = w_zh.shape[1]
    if N % tn:
        tn = N
    cost = pl.CostEstimate(
        flops=int(2 * B * Z * N),
        transcendentals=0,
        bytes_accessed=_nbytes(z, w_zh, b_zh) + B * N * 2)
    return pl.pallas_call(
        _latent_dec_kernel,
        out_shape=jax.ShapeDtypeStruct((B, N), jnp.bfloat16),
        grid=(N // tn,),
        in_specs=[pl.BlockSpec((B, Z), lambda k: (0, 0)),
                  pl.BlockSpec((Z, tn), lambda k: (0, k)),
                  pl.BlockSpec((1, tn), lambda k: (0, k))],
        out_specs=pl.BlockSpec((B, tn), lambda k: (0, k)),
        compiler_params=pltpu.CompilerParams(
            dimension_semantics=("parallel",),
            vmem_limit_bytes=32 * 1024 * 1024),
        cost_estimate=cost,
    )(z, w_zh, b_zh)


# ------------------------------ glue (JAX) --------------------------------

def vae_forward(x_nchw, kp, eps):
    """Mirrors VAE.forward: returns (x_rec [NCHW f32], mu, log_sigma2)."""
    B, C, H, W = x_nchw.shape
    N = kp["w_cat"].shape[0]
    F_ = N // (H * W)
    Cp = kp["dec_wexp"].shape[2] // W          # padded decoder out-channels

    # encoder conv + ReLU (features_encoder), im2col fused via banded weights
    x = jnp.transpose(x_nchw, (0, 2, 3, 1)).astype(jnp.bfloat16)     # NHWC, bf16
    xp = jnp.pad(x, ((0, 0), (1, 1), (1, 1), (0, 0)))
    xp = xp.reshape(B, H + 2, (W + 2) * C)
    h = conv3x3(xp, kp["enc_wexp"], kp["enc_brow"], "relu", jnp.bfloat16)  # (B,H,W*F)
    h_flat = h.reshape(B, H * W * F_)          # (h,w,f) flatten order, free reshape

    # latent: [mu | log_sigma2] reduction over N, reparameterize in finalize
    mu, log_sigma2, z = latent_encode(h_flat, kp["w_cat"], kp["b_cat"], eps)

    # W_zh: z -> h_dec (N-tiled, lane-dense bf16)
    h_dec = latent_decode(z, kp["w_zh"], kp["b_zh"])                  # (B, N)

    # decoder conv + tanh (features_decoder + torch.tanh)
    hd = h_dec.reshape(B, H, W, F_)
    hdp = jnp.pad(hd, ((0, 0), (1, 1), (1, 1), (0, 0)))
    hdp = hdp.reshape(B, H + 2, (W + 2) * F_)
    xr = conv3x3(hdp, kp["dec_wexp"], kp["dec_brow"], "tanh", jnp.float32)  # (B,H,W*Cp)

    # exit: drop padded channels, NHWC -> NCHW once (torch interface)
    x_rec = xr.reshape(B, H, W, Cp)[..., :C].transpose(0, 3, 1, 2)
    return x_rec, mu, log_sigma2


# ------------------------------ param setup -------------------------------

def init_torch_params(key, C, F_, H, W, Z):
    """Parameters in their native PyTorch layouts."""
    n = F_ * H * W
    ks = jax.random.split(key, 9)
    s = 0.05
    return {
        "enc_w": s * jax.random.normal(ks[0], (F_, C, 3, 3), jnp.float32),  # (O,I,kh,kw)
        "enc_b": s * jax.random.normal(ks[1], (F_,), jnp.float32),
        "dec_w": s * jax.random.normal(ks[2], (C, F_, 3, 3), jnp.float32),
        "dec_b": s * jax.random.normal(ks[3], (C,), jnp.float32),
        "W_hmu": s * jax.random.normal(ks[4], (Z, n), jnp.float32),         # Linear (out,in)
        "b_hmu": s * jax.random.normal(ks[5], (Z,), jnp.float32),
        "W_hlsig2": s * jax.random.normal(ks[6], (Z, n), jnp.float32),
        "b_hlsig2": s * jax.random.normal(ks[7], (Z,), jnp.float32),
        "W_zh": s * jax.random.normal(ks[8], (n, Z), jnp.float32),          # Linear (out,in)
        "b_zh": jnp.zeros((n,), jnp.float32),
    }


def _expand_conv_weight(wgt, w_sp, cout_pad):
    """(O, I, 3, 3) torch conv weight -> (3, (w_sp+2)*I, w_sp*cout_pad) banded matrix.

    acc[h, w*cout_pad + o] = sum_dy  xp_row[h+dy, :] @ Wexp[dy]
    reproduces the 3x3 'same' conv; out-channels O..cout_pad-1 are zero.
    """
    o, i = int(wgt.shape[0]), int(wgt.shape[1])
    wnp = np.asarray(wgt, dtype=np.float32)
    wexp = np.zeros((3, (w_sp + 2) * i, w_sp * cout_pad), np.float32)
    for dy in range(3):
        for dx in range(3):
            tap = wnp[:, :, dy, dx].T                        # (I, O)
            for w in range(w_sp):
                wexp[dy, (w + dx) * i:(w + dx + 1) * i,
                     w * cout_pad:w * cout_pad + o] = tap
    return jnp.asarray(wexp, jnp.bfloat16)


def _tile_bias(b, w_sp, cout_pad):
    o = int(b.shape[0])
    row = np.zeros((w_sp, cout_pad), np.float32)
    row[:, :o] = np.asarray(b, np.float32)[None, :]
    return jnp.asarray(row.reshape(1, w_sp * cout_pad), jnp.float32)


def convert_params(tp, C, F_, H, W, Z):
    """One-time relayout of torch-layout params to kernel layout.

    The kernels flatten h in (h, w, f) order (NHWC) while torch's view(B,-1) on NCHW
    flattens (f, h, w); the latent weights are permuted here so results match torch
    exactly.  MXU operands are cast to bf16 once.  Decoder out-channels are zero-padded
    so the conv output row is exactly W*Cout_pad = 128 lanes (lane-dense stores).
    """
    n = F_ * H * W

    cp_dec = C
    if (W * C) % 128:
        for c_try in range(C, C + 129):
            if (W * c_try) % 128 == 0:
                cp_dec = c_try
                break

    def lin_in_perm(w_t):   # (Z, n) rows over torch (f,h,w) -> (n, Z) rows over (h,w,f)
        return jnp.transpose(jnp.reshape(w_t, (Z, F_, H, W)), (2, 3, 1, 0)).reshape(n, Z)

    w_mu = lin_in_perm(tp["W_hmu"])
    w_ls = lin_in_perm(tp["W_hlsig2"])
    w_zh = jnp.transpose(jnp.reshape(tp["W_zh"], (F_, H, W, Z)),
                         (1, 2, 0, 3)).reshape(n, Z).T                      # (Z, n)
    b_zh = jnp.transpose(jnp.reshape(tp["b_zh"], (F_, H, W)),
                         (1, 2, 0)).reshape(1, n)

    return {
        "enc_wexp": _expand_conv_weight(tp["enc_w"], W, F_),       # W*F = 128 lanes
        "enc_brow": _tile_bias(tp["enc_b"], W, F_),
        "dec_wexp": _expand_conv_weight(tp["dec_w"], W, cp_dec),   # W*cp_dec = 128 lanes
        "dec_brow": _tile_bias(tp["dec_b"], W, cp_dec),
        "w_cat": jnp.concatenate([w_mu, w_ls], axis=1).astype(jnp.bfloat16),  # (n, 2Z)
        "b_cat": jnp.concatenate([tp["b_hmu"], tp["b_hlsig2"]]).reshape(1, 2 * Z)
                    .astype(jnp.float32),
        "w_zh": w_zh.astype(jnp.bfloat16),                                   # (Z, n)
        "b_zh": b_zh.astype(jnp.float32),
    }


# --------------------------- pure-JAX reference ----------------------------

def vae_reference(x, tp, eps, C, F_, H, W, Z):
    """f32 reference mirroring the torch module (for a tolerance check)."""
    B = x.shape[0]
    dn = ("NCHW", "OIHW", "NCHW")
    h = jax.lax.conv_general_dilated(x, tp["enc_w"], (1, 1), "SAME",
                                     dimension_numbers=dn)
    h = jax.nn.relu(h + tp["enc_b"].reshape(1, F_, 1, 1))
    hf = h.reshape(B, -1)                                     # torch (f,h,w) flatten
    mu = hf @ tp["W_hmu"].T + tp["b_hmu"]
    ls = hf @ tp["W_hlsig2"].T + tp["b_hlsig2"]
    z = mu + jnp.exp(ls) * eps                                # variance-scaled noise
    hd = (z @ tp["W_zh"].T + tp["b_zh"]).reshape(B, F_, H, W)
    xr = jax.lax.conv_general_dilated(hd, tp["dec_w"], (1, 1), "SAME",
                                      dimension_numbers=dn)
    xr = jnp.tanh(xr + tp["dec_b"].reshape(1, C, 1, 1))
    return xr, mu, ls


# --------------------------------- main ------------------------------------

if __name__ == "__main__":
    B, C, H, W = 2, 4, 16, 16     # input (NCHW, torch-style interface)
    F_ = 8                        # encoder feature channels
    Z = 32                        # latent dim

    key = jax.random.PRNGKey(0)
    k_x, k_p, k_eps = jax.random.split(key, 3)

    x = jax.random.normal(k_x, (B, C, H, W), jnp.float32)
    tp = init_torch_params(k_p, C, F_, H, W, Z)
    kp = convert_params(tp, C, F_, H, W, Z)
    eps = jax.random.normal(k_eps, (B, Z), jnp.float32)   # torch.randn_like(sigma2)

    fwd = jax.jit(vae_forward)
    x_rec, mu, log_sigma2 = fwd(x, kp, eps)
    jax.block_until_ready((x_rec, mu, log_sigma2))

    assert x_rec.shape == x.shape
    assert mu.shape == (B, Z) and log_sigma2.shape == (B, Z)
    assert bool(jnp.all(jnp.isfinite(x_rec)))
    assert bool(jnp.all(jnp.isfinite(mu))) and bool(jnp.all(jnp.isfinite(log_sigma2)))

    # correctness vs f32 reference (bf16 MXU operands => ~1e-2-level abs error expected)
    xr_ref, mu_ref, ls_ref = vae_reference(x, tp, eps, C, F_, H, W, Z)
    assert float(jnp.max(jnp.abs(mu - mu_ref))) < 0.1
    assert float(jnp.max(jnp.abs(log_sigma2 - ls_ref))) < 0.1
    assert float(jnp.max(jnp.abs(x_rec - xr_ref))) < 0.1

    print("KERNEL_OK")
</pallas_src>

<mosaic_0001>
module attributes {stable_mosaic.version = 11 : i64} {
  func.func @_latent_dec_kernel(%arg0: i32, %arg1: memref<2x32xf32, #tpu.memory_space<vmem>>, %arg2: memref<32x512xbf16, #tpu.memory_space<vmem>>, %arg3: memref<1x512xf32, #tpu.memory_space<vmem>>, %arg4: memref<2x512xbf16, #tpu.memory_space<vmem>>) attributes {dimension_semantics = [#tpu.dimension_semantics<parallel>], iteration_bounds = array<i64: 4>, scalar_prefetch = 0 : i64, scratch_operands = 0 : i64, tpu.core_type = #tpu.core_type<tc>, window_params = [{pipeline_mode = #tpu.pipeline_mode<synchronous>, transform_indices = @transform_0, window_bounds = array<i64: 2, 32>}, {transform_indices = @transform_1, window_bounds = array<i64: 32, 512>}, {transform_indices = @transform_2, window_bounds = array<i64: 1, 512>}, {transform_indices = @transform_3, window_bounds = array<i64: 2, 512>}]} {
    %c0 = arith.constant 0 : index
    %c0_0 = arith.constant 0 : index
    %0 = vector.load %arg1[%c0, %c0_0] : memref<2x32xf32, #tpu.memory_space<vmem>>, vector<2x32xf32>
    %1 = arith.truncf %0 : vector<2x32xf32> to vector<2x32xbf16>
    %c0_1 = arith.constant 0 : index
    %c0_2 = arith.constant 0 : index
    %2 = vector.load %arg2[%c0_1, %c0_2] : memref<32x512xbf16, #tpu.memory_space<vmem>>, vector<32x512xbf16>
    %cst = arith.constant dense<0.000000e+00> : vector<2x512xf32>
    %3 = tpu.matmul %1, %2, %cst {dimension_numbers = #tpu.dot_dimension_numbers<[1], [0], [0], [1], [0, 0, 1, 1], [], []>} : vector<2x32xbf16>, vector<32x512xbf16>, vector<2x512xf32> -> vector<2x512xf32>
    %c0_3 = arith.constant 0 : index
    %c0_4 = arith.constant 0 : index
    %4 = vector.load %arg3[%c0_3, %c0_4] : memref<1x512xf32, #tpu.memory_space<vmem>>, vector<1x512xf32>
    %5 = vector.broadcast %4 : vector<1x512xf32> to vector<2x512xf32>
    %6 = arith.addf %3, %5 : vector<2x512xf32>
    %7 = arith.truncf %6 : vector<2x512xf32> to vector<2x512xbf16>
    %c0_5 = arith.constant 0 : index
    %c0_6 = arith.constant 0 : index
    %8 = vector.load %arg4[%c0_5, %c0_6] : memref<2x512xbf16, #tpu.memory_space<vmem>>, vector<2x512xbf16>
    tpu.vector_store %arg4[%c0_5, %c0_6], %7 {strides = array<i32>} : memref<2x512xbf16, #tpu.memory_space<vmem>>, vector<2x512xbf16>,
    return
  }
  func.func @transform_0(%arg0: i32) -> (i32, i32) {
    %c0_i32 = arith.constant 0 : i32
    %c0_i32_0 = arith.constant 0 : i32
    %c0_i32_1 = arith.constant 0 : i32
    return %c0_i32, %c0_i32_0 : i32, i32
  }
  func.func @transform_1(%arg0: i32) -> (i32, i32) {
    %c0_i32 = arith.constant 0 : i32
    %c0_i32_0 = arith.constant 0 : i32
    return %c0_i32, %arg0 : i32, i32
  }
  func.func @transform_2(%arg0: i32) -> (i32, i32) {
    %c0_i32 = arith.constant 0 : i32
    %c0_i32_0 = arith.constant 0 : i32
    return %c0_i32, %arg0 : i32, i32
  }
  func.func @transform_3(%arg0: i32) -> (i32, i32) {
    %c0_i32 = arith.constant 0 : i32
    %c0_i32_0 = arith.constant 0 : i32
    return %c0_i32, %arg0 : i32, i32
  }
}

module attributes {stable_mosaic.version = 11 : i64} {
  func.func @_latent_enc_kernel(%arg0: i32, %arg1: memref<2x512xbf16, #tpu.memory_space<vmem>>, %arg2: memref<512x64xbf16, #tpu.memory_space<vmem>>, %arg3: memref<1x64xf32, #tpu.memory_space<vmem>>, %arg4: memref<2x32xf32, #tpu.memory_space<vmem>>, %arg5: memref<2x32xf32, #tpu.memory_space<vmem>>, %arg6: memref<2x32xf32, #tpu.memory_space<vmem>>, %arg7: memref<2x32xf32, #tpu.memory_space<vmem>>, %arg8: memref<2x64xf32, #tpu.memory_space<vmem>>) attributes {dimension_semantics = [#tpu.dimension_semantics<arbitrary>], iteration_bounds = array<i64: 4>, scalar_prefetch = 0 : i64, scratch_operands = 1 : i64, tpu.core_type = #tpu.core_type<tc>, window_params = [{transform_indices = @transform_0, window_bounds = array<i64: 2, 512>}, {transform_indices = @transform_1, window_bounds = array<i64: 512, 64>}, {pipeline_mode = #tpu.pipeline_mode<synchronous>, transform_indices = @transform_2, window_bounds = array<i64: 1, 64>}, {pipeline_mode = #tpu.pipeline_mode<synchronous>, transform_indices = @transform_3, window_bounds = array<i64: 2, 32>}, {pipeline_mode = #tpu.pipeline_mode<synchronous>, transform_indices = @transform_4, window_bounds = array<i64: 2, 32>}, {pipeline_mode = #tpu.pipeline_mode<synchronous>, transform_indices = @transform_5, window_bounds = array<i64: 2, 32>}, {pipeline_mode = #tpu.pipeline_mode<synchronous>, transform_indices = @transform_6, window_bounds = array<i64: 2, 32>}]} {
    %c0_i32 = arith.constant 0 : i32
    %0 = arith.cmpi eq, %arg0, %c0_i32 : i32
    %1 = arith.extui %0 : i1 to i32
    %c0_i32_0 = arith.constant 0 : i32
    %2 = arith.cmpi ne, %1, %c0_i32_0 : i32
    scf.if %2 {
      %cst_9 = arith.constant 0.000000e+00 : f32
      %12 = vector.broadcast %cst_9 : f32 to vector<2x64xf32>
      %c0_10 = arith.constant 0 : index
      %c0_11 = arith.constant 0 : index
      %13 = vector.load %arg8[%c0_10, %c0_11] : memref<2x64xf32, #tpu.memory_space<vmem>>, vector<2x64xf32>
      tpu.vector_store %arg8[%c0_10, %c0_11], %12 {strides = array<i32>} : memref<2x64xf32, #tpu.memory_space<vmem>>, vector<2x64xf32>,
    } else {
    }
    %c0 = arith.constant 0 : index
    %c0_1 = arith.constant 0 : index
    %3 = vector.load %arg8[%c0, %c0_1] : memref<2x64xf32, #tpu.memory_space<vmem>>, vector<2x64xf32>
    %c0_2 = arith.constant 0 : index
    %c0_3 = arith.constant 0 : index
    %4 = vector.load %arg1[%c0_2, %c0_3] : memref<2x512xbf16, #tpu.memory_space<vmem>>, vector<2x512xbf16>
    %c0_4 = arith.constant 0 : index
    %c0_5 = arith.constant 0 : index
    %5 = vector.load %arg2[%c0_4, %c0_5] : memref<512x64xbf16, #tpu.memory_space<vmem>>, vector<512x64xbf16>
    %cst = arith.constant dense<0.000000e+00> : vector<2x64xf32>
    %6 = tpu.matmul %4, %5, %cst {dimension_numbers = #tpu.dot_dimension_numbers<[1], [0], [0], [1], [0, 0, 1, 1], [], []>} : vector<2x512xbf16>, vector<512x64xbf16>, vector<2x64xf32> -> vector<2x64xf32>
    %7 = arith.addf %3, %6 : vector<2x64xf32>
    %c0_6 = arith.constant 0 : index
    %c0_7 = arith.constant 0 : index
    %8 = vector.load %arg8[%c0_6, %c0_7] : memref<2x64xf32, #tpu.memory_space<vmem>>, vector<2x64xf32>
    tpu.vector_store %arg8[%c0_6, %c0_7], %7 {strides = array<i32>} : memref<2x64xf32, #tpu.memory_space<vmem>>, vector<2x64xf32>,
    %c3_i32 = arith.constant 3 : i32
    %9 = arith.cmpi eq, %arg0, %c3_i32 : i32
    %10 = arith.extui %9 : i1 to i32
    %c0_i32_8 = arith.constant 0 : i32
    %11 = arith.cmpi ne, %10, %c0_i32_8 : i32
    scf.if %11 {
      %c0_9 = arith.constant 0 : index
      %c0_10 = arith.constant 0 : index
      %12 = vector.load %arg8[%c0_9, %c0_10] : memref<2x64xf32, #tpu.memory_space<vmem>>, vector<2x64xf32>
      %c0_11 = arith.constant 0 : index
      %c0_12 = arith.constant 0 : index
      %13 = vector.load %arg3[%c0_11, %c0_12] : memref<1x64xf32, #tpu.memory_space<vmem>>, vector<1x64xf32>
      %14 = vector.broadcast %13 : vector<1x64xf32> to vector<2x64xf32>
      %15 = arith.addf %12, %14 : vector<2x64xf32>
      %16 = vector.extract_strided_slice %15 {offsets = [0, 0], sizes = [2, 32], strides = [1, 1]} : vector<2x64xf32> to vector<2x32xf32>
      %17 = vector.extract_strided_slice %15 {offsets = [0, 32], sizes = [2, 32], strides = [1, 1]} : vector<2x64xf32> to vector<2x32xf32>
      %c0_13 = arith.constant 0 : index
      %c0_14 = arith.constant 0 : index
      %18 = vector.load %arg5[%c0_13, %c0_14] : memref<2x32xf32, #tpu.memory_space<vmem>>, vector<2x32xf32>
      tpu.vector_store %arg5[%c0_13, %c0_14], %16 {strides = array<i32>} : memref<2x32xf32, #tpu.memory_space<vmem>>, vector<2x32xf32>,
      %c0_15 = arith.constant 0 : index
      %c0_16 = arith.constant 0 : index
      %19 = vector.load %arg6[%c0_15, %c0_16] : memref<2x32xf32, #tpu.memory_space<vmem>>, vector<2x32xf32>
      tpu.vector_store %arg6[%c0_15, %c0_16], %17 {strides = array<i32>} : memref<2x32xf32, #tpu.memory_space<vmem>>, vector<2x32xf32>,
      %20 = math.exp %17 : vector<2x32xf32>
      %c0_17 = arith.constant 0 : index
      %c0_18 = arith.constant 0 : index
      %21 = vector.load %arg4[%c0_17, %c0_18] : memref<2x32xf32, #tpu.memory_space<vmem>>, vector<2x32xf32>
      %22 = arith.mulf %20, %21 : vector<2x32xf32>
      %23 = arith.addf %16, %22 : vector<2x32xf32>
      %c0_19 = arith.constant 0 : index
      %c0_20 = arith.constant 0 : index
      %24 = vector.load %arg7[%c0_19, %c0_20] : memref<2x32xf32, #tpu.memory_space<vmem>>, vector<2x32xf32>
      tpu.vector_store %arg7[%c0_19, %c0_20], %23 {strides = array<i32>} : memref<2x32xf32, #tpu.memory_space<vmem>>, vector<2x32xf32>,
    } else {
    }
    return
  }
  func.func @transform_0(%arg0: i32) -> (i32, i32) {
    %c0_i32 = arith.constant 0 : i32
    %c0_i32_0 = arith.constant 0 : i32
    return %c0_i32, %arg0 : i32, i32
  }
  func.func @transform_1(%arg0: i32) -> (i32, i32) {
    %c0_i32 = arith.constant 0 : i32
    %c0_i32_0 = arith.constant 0 : i32
    return %arg0, %c0_i32 : i32, i32
  }
  func.func @transform_2(%arg0: i32) -> (i32, i32) {
    %c0_i32 = arith.constant 0 : i32
    %c0_i32_0 = arith.constant 0 : i32
    %c0_i32_1 = arith.constant 0 : i32
    return %c0_i32, %c0_i32_0 : i32, i32
  }
  func.func @transform_3(%arg0: i32) -> (i32, i32) {
    %c0_i32 = arith.constant 0 : i32
    %c0_i32_0 = arith.constant 0 : i32
    %c0_i32_1 = arith.constant 0 : i32
    return %c0_i32, %c0_i32_0 : i32, i32
  }
  func.func @transform_4(%arg0: i32) -> (i32, i32) {
    %c0_i32 = arith.constant 0 : i32
    %c0_i32_0 = arith.constant 0 : i32
    %c0_i32_1 = arith.constant 0 : i32
    return %c0_i32, %c0_i32_0 : i32, i32
  }
  func.func @transform_5(%arg0: i32) -> (i32, i32) {
    %c0_i32 = arith.constant 0 : i32
    %c0_i32_0 = arith.constant 0 : i32
    %c0_i32_1 = arith.constant 0 : i32
    return %c0_i32, %c0_i32_0 : i32, i32
  }
  func.func @transform_6(%arg0: i32) -> (i32, i32) {
    %c0_i32 = arith.constant 0 : i32
    %c0_i32_0 = arith.constant 0 : i32
    %c0_i32_1 = arith.constant 0 : i32
    return %c0_i32, %c0_i32_0 : i32, i32
  }
}

module attributes {stable_mosaic.version = 11 : i64} {
  func.func @_conv_relu_kernel(%arg0: i32, %arg1: memref<1x18x72xbf16, #tpu.memory_space<vmem>>, %arg2: memref<3x72x128xbf16, #tpu.memory_space<vmem>>, %arg3: memref<1x128xf32, #tpu.memory_space<vmem>>, %arg4: memref<1x16x128xbf16, #tpu.memory_space<vmem>>) attributes {dimension_semantics = [#tpu.dimension_semantics<parallel>], iteration_bounds = array<i64: 2>, scalar_prefetch = 0 : i64, scratch_operands = 0 : i64, tpu.core_type = #tpu.core_type<tc>, window_params = [{transform_indices = @transform_0, window_bounds = array<i64: 1, 18, 72>}, {pipeline_mode = #tpu.pipeline_mode<synchronous>, transform_indices = @transform_1, window_bounds = array<i64: 3, 72, 128>}, {pipeline_mode = #tpu.pipeline_mode<synchronous>, transform_indices = @transform_2, window_bounds = array<i64: 1, 128>}, {transform_indices = @transform_3, window_bounds = array<i64: 1, 16, 128>}]} {
    %c0 = arith.constant 0 : index
    %c0_0 = arith.constant 0 : index
    %c0_1 = arith.constant 0 : index
    %0 = vector.load %arg1[%c0, %c0_0, %c0_1] : memref<1x18x72xbf16, #tpu.memory_space<vmem>>, vector<1x18x72xbf16>
    %1 = vector.shape_cast %0 : vector<1x18x72xbf16> to vector<18x72xbf16>
    %2 = vector.extract_strided_slice %1 {offsets = [0, 0], sizes = [16, 72], strides = [1, 1]} : vector<18x72xbf16> to vector<16x72xbf16>
    %c0_2 = arith.constant 0 : index
    %c0_3 = arith.constant 0 : index
    %c0_4 = arith.constant 0 : index
    %3 = vector.load %arg2[%c0_2, %c0_3, %c0_4] : memref<3x72x128xbf16, #tpu.memory_space<vmem>>, vector<1x72x128xbf16>
    %4 = vector.shape_cast %3 : vector<1x72x128xbf16> to vector<72x128xbf16>
    %cst = arith.constant dense<0.000000e+00> : vector<16x128xf32>
    %5 = tpu.matmul %2, %4, %cst {dimension_numbers = #tpu.dot_dimension_numbers<[1], [0], [0], [1], [0, 0, 1, 1], [], []>} : vector<16x72xbf16>, vector<72x128xbf16>, vector<16x128xf32> -> vector<16x128xf32>
    %6 = vector.extract_strided_slice %1 {offsets = [1, 0], sizes = [16, 72], strides = [1, 1]} : vector<18x72xbf16> to vector<16x72xbf16>
    %c1 = arith.constant 1 : index
    %c0_5 = arith.constant 0 : index
    %c0_6 = arith.constant 0 : index
    %7 = vector.load %arg2[%c1, %c0_5, %c0_6] : memref<3x72x128xbf16, #tpu.memory_space<vmem>>, vector<1x72x128xbf16>
    %8 = vector.shape_cast %7 : vector<1x72x128xbf16> to vector<72x128xbf16>
    %cst_7 = arith.constant dense<0.000000e+00> : vector<16x128xf32>
    %9 = tpu.matmul %6, %8, %cst_7 {dimension_numbers = #tpu.dot_dimension_numbers<[1], [0], [0], [1], [0, 0, 1, 1], [], []>} : vector<16x72xbf16>, vector<72x128xbf16>, vector<16x128xf32> -> vector<16x128xf32>
    %10 = arith.addf %5, %9 : vector<16x128xf32>
    %11 = vector.extract_strided_slice %1 {offsets = [2, 0], sizes = [16, 72], strides = [1, 1]} : vector<18x72xbf16> to vector<16x72xbf16>
    %c2 = arith.constant 2 : index
    %c0_8 = arith.constant 0 : index
    %c0_9 = arith.constant 0 : index
    %12 = vector.load %arg2[%c2, %c0_8, %c0_9] : memref<3x72x128xbf16, #tpu.memory_space<vmem>>, vector<1x72x128xbf16>
    %13 = vector.shape_cast %12 : vector<1x72x128xbf16> to vector<72x128xbf16>
    %cst_10 = arith.constant dense<0.000000e+00> : vector<16x128xf32>
    %14 = tpu.matmul %11, %13, %cst_10 {dimension_numbers = #tpu.dot_dimension_numbers<[1], [0], [0], [1], [0, 0, 1, 1], [], []>} : vector<16x72xbf16>, vector<72x128xbf16>, vector<16x128xf32> -> vector<16x128xf32>
    %15 = arith.addf %10, %14 : vector<16x128xf32>
    %c0_11 = arith.constant 0 : index
    %c0_12 = arith.constant 0 : index
    %16 = vector.load %arg3[%c0_11, %c0_12] : memref<1x128xf32, #tpu.memory_space<vmem>>, vector<1x128xf32>
    %17 = vector.broadcast %16 : vector<1x128xf32> to vector<16x128xf32>
    %18 = arith.addf %15, %17 : vector<16x128xf32>
    %cst_13 = arith.constant 0.000000e+00 : f32
    %19 = vector.broadcast %cst_13 : f32 to vector<16x128xf32>
    %20 = arith.maximumf %18, %19 : vector<16x128xf32>
    %21 = arith.truncf %20 : vector<16x128xf32> to vector<16x128xbf16>
    %c0_14 = arith.constant 0 : index
    %c0_15 = arith.constant 0 : index
    %c0_16 = arith.constant 0 : index
    %22 = vector.load %arg4[%c0_14, %c0_15, %c0_16] : memref<1x16x128xbf16, #tpu.memory_space<vmem>>, vector<1x16x128xbf16>
    %23 = vector.shape_cast %22 : vector<1x16x128xbf16> to vector<16x128xbf16>
    %24 = vector.shape_cast %21 : vector<16x128xbf16> to vector<1x16x128xbf16>
    tpu.vector_store %arg4[%c0_14, %c0_15, %c0_16], %24 {strides = array<i32>} : memref<1x16x128xbf16, #tpu.memory_space<vmem>>, vector<1x16x128xbf16>,
    return
  }
  func.func @transform_0(%arg0: i32) -> (i32, i32, i32) {
    %c0_i32 = arith.constant 0 : i32
    %c0_i32_0 = arith.constant 0 : i32
    %c0_i32_1 = arith.constant 0 : i32
    return %arg0, %c0_i32, %c0_i32_0 : i32, i32, i32
  }
  func.func @transform_1(%arg0: i32) -> (i32, i32, i32) {
    %c0_i32 = arith.constant 0 : i32
    %c0_i32_0 = arith.constant 0 : i32
    %c0_i32_1 = arith.constant 0 : i32
    %c0_i32_2 = arith.constant 0 : i32
    return %c0_i32, %c0_i32_0, %c0_i32_1 : i32, i32, i32
  }
  func.func @transform_2(%arg0: i32) -> (i32, i32) {
    %c0_i32 = arith.constant 0 : i32
    %c0_i32_0 = arith.constant 0 : i32
    %c0_i32_1 = arith.constant 0 : i32
    return %c0_i32, %c0_i32_0 : i32, i32
  }
  func.func @transform_3(%arg0: i32) -> (i32, i32, i32) {
    %c0_i32 = arith.constant 0 : i32
    %c0_i32_0 = arith.constant 0 : i32
    %c0_i32_1 = arith.constant 0 : i32
    return %arg0, %c0_i32, %c0_i32_0 : i32, i32, i32
  }
}

module attributes {stable_mosaic.version = 11 : i64} {
  func.func @_conv_tanh_kernel(%arg0: i32, %arg1: memref<1x18x144xbf16, #tpu.memory_space<vmem>>, %arg2: memref<3x144x128xbf16, #tpu.memory_space<vmem>>, %arg3: memref<1x128xf32, #tpu.memory_space<vmem>>, %arg4: memref<1x16x128xf32, #tpu.memory_space<vmem>>) attributes {dimension_semantics = [#tpu.dimension_semantics<parallel>], iteration_bounds = array<i64: 2>, scalar_prefetch = 0 : i64, scratch_operands = 0 : i64, tpu.core_type = #tpu.core_type<tc>, window_params = [{transform_indices = @transform_0, window_bounds = array<i64: 1, 18, 144>}, {pipeline_mode = #tpu.pipeline_mode<synchronous>, transform_indices = @transform_1, window_bounds = array<i64: 3, 144, 128>}, {pipeline_mode = #tpu.pipeline_mode<synchronous>, transform_indices = @transform_2, window_bounds = array<i64: 1, 128>}, {transform_indices = @transform_3, window_bounds = array<i64: 1, 16, 128>}]} {
    %c0 = arith.constant 0 : index
    %c0_0 = arith.constant 0 : index
    %c0_1 = arith.constant 0 : index
    %0 = vector.load %arg1[%c0, %c0_0, %c0_1] : memref<1x18x144xbf16, #tpu.memory_space<vmem>>, vector<1x18x144xbf16>
    %1 = vector.shape_cast %0 : vector<1x18x144xbf16> to vector<18x144xbf16>
    %2 = vector.extract_strided_slice %1 {offsets = [0, 0], sizes = [16, 144], strides = [1, 1]} : vector<18x144xbf16> to vector<16x144xbf16>
    %c0_2 = arith.constant 0 : index
    %c0_3 = arith.constant 0 : index
    %c0_4 = arith.constant 0 : index
    %3 = vector.load %arg2[%c0_2, %c0_3, %c0_4] : memref<3x144x128xbf16, #tpu.memory_space<vmem>>, vector<1x144x128xbf16>
    %4 = vector.shape_cast %3 : vector<1x144x128xbf16> to vector<144x128xbf16>
    %cst = arith.constant dense<0.000000e+00> : vector<16x128xf32>
    %5 = tpu.matmul %2, %4, %cst {dimension_numbers = #tpu.dot_dimension_numbers<[1], [0], [0], [1], [0, 0, 1, 1], [], []>} : vector<16x144xbf16>, vector<144x128xbf16>, vector<16x128xf32> -> vector<16x128xf32>
    %6 = vector.extract_strided_slice %1 {offsets = [1, 0], sizes = [16, 144], strides = [1, 1]} : vector<18x144xbf16> to vector<16x144xbf16>
    %c1 = arith.constant 1 : index
    %c0_5 = arith.constant 0 : index
    %c0_6 = arith.constant 0 : index
    %7 = vector.load %arg2[%c1, %c0_5, %c0_6] : memref<3x144x128xbf16, #tpu.memory_space<vmem>>, vector<1x144x128xbf16>
    %8 = vector.shape_cast %7 : vector<1x144x128xbf16> to vector<144x128xbf16>
    %cst_7 = arith.constant dense<0.000000e+00> : vector<16x128xf32>
    %9 = tpu.matmul %6, %8, %cst_7 {dimension_numbers = #tpu.dot_dimension_numbers<[1], [0], [0], [1], [0, 0, 1, 1], [], []>} : vector<16x144xbf16>, vector<144x128xbf16>, vector<16x128xf32> -> vector<16x128xf32>
    %10 = arith.addf %5, %9 : vector<16x128xf32>
    %11 = vector.extract_strided_slice %1 {offsets = [2, 0], sizes = [16, 144], strides = [1, 1]} : vector<18x144xbf16> to vector<16x144xbf16>
    %c2 = arith.constant 2 : index
    %c0_8 = arith.constant 0 : index
    %c0_9 = arith.constant 0 : index
    %12 = vector.load %arg2[%c2, %c0_8, %c0_9] : memref<3x144x128xbf16, #tpu.memory_space<vmem>>, vector<1x144x128xbf16>
    %13 = vector.shape_cast %12 : vector<1x144x128xbf16> to vector<144x128xbf16>
    %cst_10 = arith.constant dense<0.000000e+00> : vector<16x128xf32>
    %14 = tpu.matmul %11, %13, %cst_10 {dimension_numbers = #tpu.dot_dimension_numbers<[1], [0], [0], [1], [0, 0, 1, 1], [], []>} : vector<16x144xbf16>, vector<144x128xbf16>, vector<16x128xf32> -> vector<16x128xf32>
    %15 = arith.addf %10, %14 : vector<16x128xf32>
    %c0_11 = arith.constant 0 : index
    %c0_12 = arith.constant 0 : index
    %16 = vector.load %arg3[%c0_11, %c0_12] : memref<1x128xf32, #tpu.memory_space<vmem>>, vector<1x128xf32>
    %17 = vector.broadcast %16 : vector<1x128xf32> to vector<16x128xf32>
    %18 = arith.addf %15, %17 : vector<16x128xf32>
    %19 = math.tanh %18 : vector<16x128xf32>
    %c0_13 = arith.constant 0 : index
    %c0_14 = arith.constant 0 : index
    %c0_15 = arith.constant 0 : index
    %20 = vector.load %arg4[%c0_13, %c0_14, %c0_15] : memref<1x16x128xf32, #tpu.memory_space<vmem>>, vector<1x16x128xf32>
    %21 = vector.shape_cast %20 : vector<1x16x128xf32> to vector<16x128xf32>
    %22 = vector.shape_cast %19 : vector<16x128xf32> to vector<1x16x128xf32>
    tpu.vector_store %arg4[%c0_13, %c0_14, %c0_15], %22 {strides = array<i32>} : memref<1x16x128xf32, #tpu.memory_space<vmem>>, vector<1x16x128xf32>,
    return
  }
  func.func @transform_0(%arg0: i32) -> (i32, i32, i32) {
    %c0_i32 = arith.constant 0 : i32
    %c0_i32_0 = arith.constant 0 : i32
    %c0_i32_1 = arith.constant 0 : i32
    return %arg0, %c0_i32, %c0_i32_0 : i32, i32, i32
  }
  func.func @transform_1(%arg0: i32) -> (i32, i32, i32) {
    %c0_i32 = arith.constant 0 : i32
    %c0_i32_0 = arith.constant 0 : i32
    %c0_i32_1 = arith.constant 0 : i32
    %c0_i32_2 = arith.constant 0 : i32
    return %c0_i32, %c0_i32_0, %c0_i32_1 : i32, i32, i32
  }
  func.func @transform_2(%arg0: i32) -> (i32, i32) {
    %c0_i32 = arith.constant 0 : i32
    %c0_i32_0 = arith.constant 0 : i32
    %c0_i32_1 = arith.constant 0 : i32
    return %c0_i32, %c0_i32_0 : i32, i32
  }
  func.func @transform_3(%arg0: i32) -> (i32, i32, i32) {
    %c0_i32 = arith.constant 0 : i32
    %c0_i32_0 = arith.constant 0 : i32
    %c0_i32_1 = arith.constant 0 : i32
    return %arg0, %c0_i32, %c0_i32_0 : i32, i32, i32
  }
}

</mosaic_0001>

<bundles_post_ra>
// kernel: vae_forward.6
= control target key start
LH: loop header
LB: loop body
LE: loop exit
PB: predicated region body
PF: predicated region fallthrough
CT: control target
= control target key end

     0   :  { %s551_s12 = smov 0   ;;  %s553_s13 = smov 0   ;;  %s613_s0 = inlined_call_operand.vmem [shape: f32[2,32], index: 0, kind: input, shape index: {}]   ;;  %s614_s1 = inlined_call_operand.vmem [shape: bf16[32,2048], index: 1, kind: input, shape index: {}]   ;;  %s615_s2 = inlined_call_operand.vmem [shape: f32[1,2048], index: 2, kind: input, shape index: {}]   ;;  %s616_s3 = inlined_call_operand.vmem [shape: bf16[2,2048], index: 3, kind: output, shape index: {}]  }
   0x1   :  { %s555_s14 = smov 0  }
   0x2 LB: > { %s425_s15 = sadd.s32 4294967295, %s529_s14   ;;  %s568_s16 = sadd.s32 1, %s529_s14   ;;  %s529_s14 = sphi %s555_s14, %s619_s14   ;;  %s525_s13 = sphi %s553_s13, %s618_s13   ;;  %s521_s12 = sphi %s551_s12, %s617_s12  }
   0x3   : > { %s38_s17 = ssub.s32 %s529_s14, %s568_s16  ;;  %s41_s18 = sadd.s32 1, %s525_s13 }
   0x4   : > { %p39_p0 = scmp.eq.s32.totalorder %s38_s17, 0  ;;  %p48_p1 = scmp.ne.s32.totalorder %s525_s13, %s521_s12 }
   0x5   : > { %p49_p2 = scmp.eq.s32.totalorder %s529_s14, 0  ;;  %p428_p4 = scmp.ge.s32.totalorder %s529_s14, 4 }
   0x6   : > { %s577_s19 = scalar_select %p39_p0, %s525_s13, %s41_s18  }
   0x7   : > { %p50_p3 = por %p49_p2, %p48_p1  ;;  %129 = sbr.rel (%p428_p4) target bundleno = 24 (0x18), region = 20 }
   0xc   : > { %132 = sbr.rel (!%p50_p3) target bundleno = 24 (0x18), region = 24  ;;  %s134_s20 = sand.u32 (%p50_p3), 1, %s525_s13  }
   0xd   : > { %s474_s21 = sshll.u32 (%p50_p3), %s529_s14, 4  ;;  %s429_s22 = sshll.u32 (%p50_p3), %s134_s20, 6 }
   0xe   : > { %s139_s25 = scalar_lea.vmem (%p50_p3), %s614_s1, %s474_s21  ;;  %s136_s26 = scalar_lea.vmem (%p50_p3), [#allocation2], %s429_s22 }
   0xf   : > { %v152_v0 = vld [vmem:[%s139_s25] sm:$0xff] (%p50_p3)  ;;  %v154_v1 = vld [vmem:[%s139_s25 + $0x8] sm:$0xff] (%p50_p3) }
  0x10   : > { %v156_v2 = vld [vmem:[%s139_s25 + $0x40] sm:$0xff] (%p50_p3)  ;;  %153 = vst [vmem:[%s136_s26] sm:$0xff] (%p50_p3), %v152_v0  ;;  %v158_v3 = vld [vmem:[%s139_s25 + $0x48] sm:$0xff] (%p50_p3) }
  0x11   : > { %155 = vst [vmem:[%s136_s26 + $0x8] sm:$0xff] %v154_v1  ;;  %v160_v4 = vld [vmem:[%s139_s25 + $0x80] sm:$0xff]  ;;  %v162_v5 = vld [vmem:[%s139_s25 + $0x88] sm:$0xff] }
  0x12   : > { %157 = vst [vmem:[%s136_s26 + $0x10] sm:$0xff] %v156_v2  ;;  %v164_v6 = vld [vmem:[%s139_s25 + $0xc0] sm:$0xff]  ;;  %v166_v7 = vld [vmem:[%s139_s25 + $0xc8] sm:$0xff] }
  0x13   : > { %159 = vst [vmem:[%s136_s26 + $0x18] sm:$0xff] %v158_v3 }
  0x14   : > { %161 = vst [vmem:[%s136_s26 + $0x20] sm:$0xff] %v160_v4 }
  0x15   : > { %163 = vst [vmem:[%s136_s26 + $0x28] sm:$0xff] %v162_v5 }
  0x16   : > { %165 = vst [vmem:[%s136_s26 + $0x30] sm:$0xff] %v164_v6 }
  0x17   : > { %167 = vst [vmem:[%s136_s26 + $0x38] sm:$0xff] %v166_v7 }
  0x18 PF: > { %p432_p5 = scmp.ge.s32.totalorder %s529_s14, 1  ;;  %p180_p6 = scmp.lt.s32.totalorder %s529_s14, 5 }
  0x1a   : > { %p181_p7 = pnand %p432_p5, %p180_p6 }
  0x1b   : > { %s187_s27 = sand.u32 (!%p181_p7), 1, %s521_s12   ;;  %s434_s5 = sshll.u32 (!%p181_p7), %s425_s15, 2 }
  0x1c   : > { %184 = sbr.rel (%p181_p7) target bundleno = 186 (0xba), region = 51  ;;  %s433_s28 = sshll.u32 (!%p181_p7), %s187_s27, 6 }
  0x1d   : > { %s189_s29 = scalar_lea.vmem (!%p181_p7), [#allocation2], %s433_s28  ;;  %p215_p8 = scmp.lt.s32.totalorder (!%p181_p7), %s434_s5, 15 }
  0x21   : > { %v454_v8 = vld [vmem:[%s189_s29 + $0x20] sm:$0xf]  ;;  %v481_v9 = vld [vmem:[%s189_s29 + $0x2c] sm:$0xf0]  ;;  %v479_v10 = vld [vmem:[%s189_s29 + $0x24] sm:$0xf] }
  0x22   : > { %v455_v11 = vor.u32 %v481_v9, %v454_v8  ;;  %v456_v12 = vld [vmem:[%s189_s29 + $0x30] sm:$0xf0]  ;;  %v462_v13 = vld [vmem:[%s189_s29 + $0x28] sm:$0xf]  ;;  %v482_v14 = vld [vmem:[%s189_s29 + $0x34] sm:$0xf0] }
  0x23   : > { %v225_v15 = vld [vmem:[%s613_s0] sm:$0x3]  ;;  %v459_v16 = vor.u32 %v479_v10, %v456_v12  ;;  %v463_v17 = vor.u32 %v482_v14, %v462_v13  ;;  %v480_v18 = vld [vmem:[%s189_s29 + $0x2c] sm:$0xf]  ;;  %v464_v19 = vld [vmem:[%s189_s29 + $0x38] sm:$0xf0] }
  0x24   : > { %v438_v20 = vld [vmem:[%s189_s29] sm:$0xf]  ;;  %295 = vmatpush.bf16.msra.mxu0 %v455_v11  ;;  %v467_v21 = vor.u32 %v480_v18, %v464_v19  ;;  %v477_v22 = vld [vmem:[%s189_s29 + $0xc] sm:$0xf0]  ;;  %v475_v23 = vld [vmem:[%s189_s29 + $0x4] sm:$0xf]  ;;  %v226_v33 = vpack.c.bf16 %v225_v15, %v225_v15 }
  0x25   : > { %v440_v24 = vld [vmem:[%s189_s29 + $0x10] sm:$0xf0]  ;;  %308 = vmatpush.bf16.msra.mxu1 %v459_v16  ;;  %321 = vmatpush.bf16.msra.mxu2 %v463_v17  ;;  %v439_v25 = vor.u32 %v477_v22, %v438_v20  ;;  %v446_v27 = vld [vmem:[%s189_s29 + $0x8] sm:$0xf]  ;;  %v478_v28 = vld [vmem:[%s189_s29 + $0x14] sm:$0xf0] }
  0x26   : > { %v443_v26 = vor.u32 %v475_v23, %v440_v24  ;;  %v476_v29 = vld [vmem:[%s189_s29 + $0xc] sm:$0xf]  ;;  %334 = vmatpush.bf16.msra.mxu3 %v467_v21  ;;  %v447_v30 = vor.u32 %v478_v28, %v446_v27  ;;  %v448_v31 = vld [vmem:[%s189_s29 + $0x18] sm:$0xf0]  ;;  %vm285_vm0 = vcmask 261120   ;;  %s621_s5 = smov (!%p215_p8, %s434_s5), 15 }
  0x27   : > { %v451_v32 = vor.u32 %v476_v29, %v448_v31  ;;  %s217_s8 = scalar_lea.vmem %s615_s2, %s621_s5  ;;  %vm348_vm1 = vcmask 1040384   ;;  %vm352_vm2 = vcmask 1042434   ;;  %vm356_vm3 = vcmask 1041408   ;;  %s222_s11 = scalar_lea.vmem %s616_s3, %s621_s5 }
  0x28   : > { %296 = vmatpush.bf16.msra.mxu0 %v439_v25  ;;  %v235_v34 = vld [vmem:[%s217_s8] sm:$0xf] }
  0x29   : > { %309 = vmatpush.bf16.msra.mxu1 %v443_v26  ;;  %322 = vmatpush.bf16.msra.mxu2 %v447_v30  ;;  %v237_v35 = vperm.slane %v235_v34, 0  ;;  %v238_v36 = vperm.slane %v235_v34, 1  ;;  %v239_v41 = vperm.slane %v235_v34, 2  ;;  %v240_v42 = vperm.slane %v235_v34, 3 }
  0x2a   : > { %335 = vmatpush.bf16.msra.mxu3 %v451_v32 }
  0x2b   : > { %468 = vmatmul.msk.bf16.vlgmr.msra.gmra.mxu0 %vm285_vm0, %v226_v33 }
  0x2c   : > { %469 = vmatmul.msk.bf16.vlgmr.msra.gmra.mxu1 %vm285_vm0, %v226_v33  ;;  %470 = vmatmul.msk.bf16.vlgmr.msra.gmra.mxu2 %vm285_vm0, %v226_v33 }
  0x2d   : > { %471 = vmatmul.msk.bf16.vlgmr.msra.gmra.mxu3 %vm285_vm0, %v226_v33 }
  0xa8   : > { %v298_v37 = vpop.f32.mrf.mxu0 }
  0xa9   : > { %v311_v38 = vpop.f32.mrf.mxu1  ;;  %v299_v39 = vadd.f32 %v298_v37, %v237_v35 }
  0xaa   : > { %v312_v40 = vadd.f32 %v311_v38, %v238_v36 }
  0xac   : > { %v341_v43 = vpack.c.bf16 %v312_v40, %v299_v39 }
  0xae   : > { %v345_v50 = vrot.slane %v341_v43, 3 }
  0xaf   : > { %v324_v44 = vpop.f32.mrf.mxu2 }
  0xb0   : > { %v325_v45 = vadd.f32 %v324_v44, %v239_v41  ;;  %v337_v46 = vpop.f32.mrf.mxu3  ;;  %v300_v47 = vpop.f32.mrf.mxu0  ;;  %v351_v54 = vsel %vm348_vm1, %v341_v43, %v345_v50 }
  0xb1   : > { %v338_v48 = vadd.f32 %v337_v46, %v240_v42  ;;  %v313_v49 = vpop.f32.mrf.mxu1 }
  0xb3   : > { %v342_v51 = vpack.c.bf16 %v338_v48, %v325_v45 }
  0xb5   : > { %v346_v52 = vrot.slane %v342_v51, 6  ;;  %v347_v53 = vrot.slane %v342_v51, 1 }
  0xb7   : > { %v355_v55 = vsel %vm352_vm2, %v346_v52, %v347_v53  ;;  %v326_v56 = vpop.f32.mrf.mxu2 }
  0xb8   : > { %v357_v57 = vsel %vm356_vm3, %v351_v54, %v355_v55  ;;  %v339_v58 = vpop.f32.mrf.mxu3 }
  0xb9   : > { %359 = vst [vmem:[%s222_s11] sm:$0xf] %v357_v57 }
  0xba PF: > { %p10_p9 = scmp.ge.s32.totalorder %s568_s16, 6   ;;  %s617_s12 = smov %s525_s13 }
  0xbb   : > { %s618_s13 = smov %s577_s19  ;;  %s619_s14 = smov %s568_s16 }
  0xbc   :  { %12 = sbr.rel (!%p10_p9) target bundleno = 2 (0x2), region = 93 }

// kernel: vae_forward.4
= control target key start
LH: loop header
LB: loop body
LE: loop exit
PB: predicated region body
PF: predicated region fallthrough
CT: control target
= control target key end

     0   :  { %8 = vsyncpa [#allocation3], 0  ;;  %s643_s12 = smov 0   ;;  %s670_s0 = inlined_call_operand.vmem [shape: bf16[2,18,72], index: 0, kind: input, shape index: {}]   ;;  %s671_s1 = inlined_call_operand.hbm [shape: bf16[3,72,128], index: 1, kind: input, shape index: {}]   ;;  %s672_s2 = inlined_call_operand.vmem [shape: f32[1,128], index: 2, kind: input, shape index: {}]   ;;  %s673_s3 = inlined_call_operand.vmem [shape: bf16[2,16,128], index: 3, kind: output, shape index: {}]  }
   0x1 LB: > { %s124_s15 = sshll.u32 %s671_s1, 4  ;;  %s469_s16 = sadd.s32 4294967295, %s618_s12   ;;  %s618_s12 = sphi %s643_s12, %s14_s12   ;;  %s125_s15 = int_to_ptr.hbm [resolvable:$true] %s124_s15 }
   0x2   : > { %p471_p0 = scmp.ge.s32.totalorder %s618_s12, 1  ;;  %p113_p1 = scmp.lt.s32.totalorder %s618_s12, 3 }
   0x3   : > { %p564_p2 = scmp.eq.s32.totalorder %s469_s16, 0  ;;  %s620_s17 = smov [#allocation2]  }
   0x4   : > { %p114_p3 = pnand %p471_p0, %p113_p1  ;;  %s126_s18 = sshll.u32 %s620_s17, 4  ;;  %s127_s18 = int_to_ptr.vmem [resolvable:$true] %s126_s18 }
   0x5   : > { %s621_s19 = smov 64   ;;  %s622_s20 = smov 4  }
   0x6   : > { %p560_p4 = pneg %p114_p3  ;;  %153 = sbr.rel (%p114_p3) target bundleno = 187 (0xbb), region = 32 }
   0x8   : > { %p561_p5 = pnand %p564_p2, %p560_p4 }
   0xa   : > { %563 = dma.hbm_to_vmem [thread:$0]  (!%p561_p5), %s125_s15, 1728, %s127_s18, [#allocation3], %s621_s19, %s621_s19, %s622_s20  }
   0xb   : > { %613 = dma.done.wait (%p564_p2), [#allocation3], 1728  }
   0xc   : > { %615 = vsyncadd (%p564_p2), [#allocation3], 4294965568  ;;  %p178_p6 = scmp.lt.s32.totalorder %s469_s16, 1  ;;  %v210_v0 = vld [vmem:[#allocation2 + $0x44] sm:$0xf]  ;;  %vm263_vm0 = vcmask 1043456  }
   0xd   : > { %v200_v1 = vld [vmem:[#allocation2 + $0x20] sm:$0xf]  ;;  %v336_v2 = vld [vmem:[#allocation2 + $0x68] sm:$0xf]  ;;  %v249_v3 = vunpack.c.l.b16 %v210_v0  ;;  %v541_v14 = vld [vmem:[#allocation2 + $0x18] sm:$0xff]  ;;  %vm337_vm2 = vcmask 1046528  }
   0xe   : > { %s675_s16 = smov (!%p178_p6, %s469_s16), 1  ;;  %v298_v4 = vunpack.c.l.b16 %v200_v1  ;;  %v358_v5 = vunpack.c.l.b16 %v336_v2  ;;  %v545_v12 = vld [vmem:[#allocation2 + $0x3c] sm:$0xff]  ;;  %v544_v18 = vld [vmem:[#allocation2 + $0x34] sm:$0xff]  ;;  %v543_v23 = vld [vmem:[#allocation2 + $0x2c] sm:$0xff]  ;;  %vm219_vm1 = vsmask.f32 7424 }
   0xf   : > { %s555_s21 = smul.u32 12, %s675_s16  ;;  %v254_v6 = vpack.c.b16 %v249_v3, %v249_v3  ;;  %v549_v17 = vld [vmem:[#allocation2 + $0x60] sm:$0xff]  ;;  %v540_v19 = vld [vmem:[#allocation2 + $0x10] sm:$0xff]  ;;  %v548_v22 = vld [vmem:[#allocation2 + $0x58] sm:$0xff]  ;;  %vm259_vm3 = vcmask 588800   ;;  %s536_s27 = sshll.u32 %s675_s16, 3 }
  0x10   : > { %v303_v7 = vpack.c.b16 %v298_v4, %v298_v4  ;;  %v363_v8 = vpack.c.b16 %v358_v5, %v358_v5  ;;  %v539_v24 = vld [vmem:[#allocation2 + $0x8] sm:$0xff]  ;;  %v547_v28 = vld [vmem:[#allocation2 + $0x50] sm:$0xff]  ;;  %v538_v30 = vld [vmem:[#allocation2] sm:$0xff]  ;;  %s187_s30 = scalar_lea.vmem %s673_s3, %s536_s27 }
  0x11   : > { %s182_s24 = scalar_lea.vmem %s670_s0, %s555_s21  ;;  %v265_v9 = vsel %vm263_vm0, %v254_v6, 0  ;;  %v542_v29 = vld [vmem:[#allocation2 + $0x24] sm:$0xff]  ;;  %v577_v45 = vld [vmem:[%s672_s2] ss:$0 sm:$0xff] }
  0x12   : > { %v311_v10 = vsel %vm263_vm0, %v303_v7, 0  ;;  %v372_v11 = vsel %vm263_vm0, %v363_v8, 0  ;;  %v191_v13 = vld [vmem:[%s182_s24 + $0x8] sm:$0x1]  ;;  %270 = vmatpush.bf16.msra.mxu0 %v265_v9  ;;  %v537_v15 = vld [vmem:[%s182_s24] sm:$0xff] }
  0x13   : > { %316 = vmatpush.bf16.msra.mxu1 %v311_v10  ;;  %v216_v16 = vunpack.c.l.b16 %v191_v13  ;;  %377 = vmatpush.bf16.msra.mxu2 %v372_v11  ;;  %v223_v21 = vshll.u32 %v537_v15, 16  ;;  %v221_v25 = vshrl.u32 %v537_v15, 16  ;;  %v546_v33 = vld [vmem:[#allocation2 + $0x48] sm:$0xff]  ;;  %v338_v34 = vrot.slane %v537_v15, 1 }
  0x15   : > { %v218_v20 = vpack.c.b16 %v216_v16, %v216_v16  ;;  %v225_v26 = vrot.slane %v223_v21, 1 }
  0x16   : > { %271 = vmatpush.bf16.msra.mxu0 %v545_v12 }
  0x17   : > { %317 = vmatpush.bf16.msra.mxu1 %v541_v14  ;;  %378 = vmatpush.bf16.msra.mxu2 %v549_v17  ;;  %v228_v27 = vshll.u32 %v218_v20, 16  ;;  %v226_v31 = vor.u32 %v225_v26, %v221_v25  ;;  %v339_v35 = vrot.slane %v218_v20, 1 }
  0x19   : > { %v230_v32 = vrot.slane %v228_v27, 1  ;;  %v340_v37 = vsel %vm337_vm2, %v338_v34, %v339_v35 }
  0x1a   : > { %272 = vmatpush.bf16.msra.mxu0 %v544_v18 }
  0x1b   : > { %318 = vmatpush.bf16.msra.mxu1 %v540_v19  ;;  %379 = vmatpush.bf16.msra.mxu2 %v548_v22  ;;  %v231_v36 = vsel %vm219_vm1, %v226_v31, %v230_v32 }
  0x1e   : > { %273 = vmatpush.bf16.msra.mxu0 %v543_v23 }
  0x1f   : > { %319 = vmatpush.bf16.msra.mxu1 %v539_v24  ;;  %380 = vmatpush.bf16.msra.mxu2 %v547_v28 }
  0x22   : > { %274 = vmatpush.bf16.msra.mxu0 %v542_v29 }
  0x23   : > { %320 = vmatpush.bf16.msra.mxu1 %v538_v30  ;;  %381 = vmatpush.bf16.msra.mxu2 %v546_v33 }
  0x25   : > { %499 = vmatmul.msk.bf16.vlgmr.msra.gmra.mxu0 %vm259_vm3, %v231_v36 }
  0x26   : > { %516 = vmatmul.msk.bf16.vlgmr.msra.gmra.mxu1 %vm259_vm3, %v537_v15  ;;  %533 = vmatmul.msk.bf16.vlgmr.msra.gmra.mxu2 %vm259_vm3, %v340_v37 }
  0xa2   : > { %v276_v38 = vpop.f32.mrf.mxu0 }
  0xa3   : > { %v322_v39 = vpop.f32.mrf.mxu1 }
  0xa4   : > { %v323_v41 = vadd.f32 %v322_v39, %v276_v38 }
  0xa9   : > { %v383_v40 = vpop.f32.mrf.mxu2 }
  0xaa   : > { %v278_v42 = vpop.f32.mrf.mxu0  ;;  %v388_v44 = vadd.f32 %v383_v40, %v323_v41 }
  0xab   : > { %v324_v43 = vpop.f32.mrf.mxu1 }
  0xac   : > { %v325_v46 = vadd.f32 %v324_v43, %v278_v42  ;;  %v394_v48 = vadd.f32 %v577_v45, %v388_v44 }
  0xae   : > { %v396_v51 = vmax.f32 %v394_v48, 0.0 }
  0xb1   : > { %v385_v47 = vpop.f32.mrf.mxu2 }
  0xb2   : > { %v389_v49 = vadd.f32 %v385_v47, %v325_v46 }
  0xb4   : > { %v395_v50 = vadd.f32 %v577_v45, %v389_v49 }
  0xb6   : > { %v397_v52 = vmax.f32 %v395_v50, 0.0 }
  0xb8   : > { %v553_v53 = vpack.c.bf16 %v397_v52, %v396_v51 }
  0xba   : > { %554 = vst [vmem:[%s187_s30] sm:$0xff] %v553_v53  }
  0xbb PF: > { %s14_s12 = sadd.s32 1, %s618_s12  }
  0xbc   : > { %p11_p7 = scmp.ge.s32.totalorder %s14_s12, 4  }
  0xbe   :  { %13 = sbr.rel (!%p11_p7) target bundleno = 1 (0x1), region = 69 }
  0xc3   :  { %423 = vsyncpa [#allocation3], 1 }
  0xc4   :  { %425 = vsyncpa [#allocation3 + $0x1], 1 }

// kernel: vae_forward.5
= control target key start
LH: loop header
LB: loop body
LE: loop exit
PB: predicated region body
PF: predicated region fallthrough
CT: control target
= control target key end

     0   :  { %12 = vsyncpa [#allocation4], 0  ;;  %s1110_s0 = inlined_call_operand.vmem [shape: bf16[2,2048], index: 0, kind: input, shape index: {}]   ;;  %s1111_s1 = inlined_call_operand.vmem [shape: bf16[2048,64], index: 1, kind: input, shape index: {}]   ;;  %s1112_s2 = inlined_call_operand.vmem [shape: f32[1,64], index: 2, kind: input, shape index: {}]   ;;  %s1113_s3 = inlined_call_operand.vmem [shape: f32[2,32], index: 3, kind: input, shape index: {}]   ;;  %s1114_s4 = inlined_call_operand.hbm [shape: f32[2,32], index: 4, kind: output, shape index: {0}]   ;;  %s1115_s5 = inlined_call_operand.hbm [shape: f32[2,32], index: 5, kind: output, shape index: {1}]   ;;  %s1116_s6 = inlined_call_operand.vmem [shape: f32[2,32], index: 6, kind: output, shape index: {2}]  }
   0x1   :  { %13 = vsyncpa [#allocation6], 0  ;;  %s1017_s21 = smov 0  }
   0x2 LB: > { %s1023_s22 = sadd.s32 4294967295, %s975_s21   ;;  %p705_p0 = scmp.ge.s32.totalorder %s975_s21, 1  ;;  %s975_s21 = sphi %s1017_s21, %s19_s21  }
   0x3   : > { %p215_p1 = scmp.lt.s32.totalorder %s975_s21, 5 }
   0x5   : > { %p216_p2 = pnand %p705_p0, %p215_p1 }
   0x6   : > { %s706_s23 = sshll.u32 (!%p216_p2), %s1023_s22, 2  ;;  %s707_s24 = sshll.u32 (!%p216_p2), %s1023_s22, 6 }
   0x7   : > { %219 = sbr.rel (%p216_p2) target bundleno = 442 (0x1ba), region = 36  ;;  %p245_p3 = scmp.lt.s32.totalorder (!%p216_p2), %s706_s23, 15 }
   0x8   : > { %p250_p4 = scmp.lt.s32.totalorder (!%p216_p2), %s707_s24, 255  ;;  %p709_p5 = scmp.ne.s32.totalorder (!%p216_p2), %s1023_s22, 0 }
   0xc   : > { %s1118_s23 = smov (!%p245_p3, %s706_s23), 15  ;;  %s1120_s24 = smov (!%p250_p4, %s707_s24), 255 }
   0xd   : > { %s247_s27 = scalar_lea.vmem %s1110_s0, %s1118_s23  ;;  %s708_s28 = sshll.u32 %s1120_s24, 2 }
   0xe   : > { %s1038_s7 = scalar_lea.vmem %s1111_s1, %s708_s28  ;;  %258 = sbr.rel (%p709_p5) target bundleno = 21 (0x15), region = 40 }
  0x13   : > { %vm259_vm0 = vcmask 517120   ;;  %v977_v0 = vmov 0.0  }
  0x14   : > { %260 = vst.msk [vmem:[#allocation2] sm:$0x3] %vm259_vm0, %v977_v0 }
  0x15 PF: > { %v852_v1 = vld [vmem:[%s1038_s7 + $0x38] sm:$0xff]  ;;  %v851_v5 = vld [vmem:[%s1038_s7 + $0x30] sm:$0xff]  ;;  %v850_v9 = vld [vmem:[%s1038_s7 + $0x28] sm:$0xff]  ;;  %vm582_vm1 = vcmask 517120   ;;  %p838_p6 = scmp.ne.s32.totalorder %s1023_s22, 3 }
  0x16   : > { %v860_v2 = vld [vmem:[%s1038_s7 + $0x78] sm:$0xff]  ;;  %529 = vmatpush.bf16.msra.mxu0 %v852_v1  ;;  %v859_v6 = vld [vmem:[%s1038_s7 + $0x70] sm:$0xff]  ;;  %v858_v10 = vld [vmem:[%s1038_s7 + $0x68] sm:$0xff]  ;;  %s978_s12 = smov (!%p838_p6), 32   ;;  %s979_s15 = smov (!%p838_p6), 96  }
  0x17   : > { %v868_v3 = vld [vmem:[%s1038_s7 + $0xb8] sm:$0xff]  ;;  %542 = vmatpush.bf16.msra.mxu1 %v860_v2  ;;  %v867_v7 = vld [vmem:[%s1038_s7 + $0xb0] sm:$0xff]  ;;  %v866_v11 = vld [vmem:[%s1038_s7 + $0xa8] sm:$0xff] }
  0x18   : > { %v876_v4 = vld [vmem:[%s1038_s7 + $0xf8] sm:$0xff]  ;;  %555 = vmatpush.bf16.msra.mxu2 %v868_v3  ;;  %v875_v8 = vld [vmem:[%s1038_s7 + $0xf0] sm:$0xff]  ;;  %v874_v12 = vld [vmem:[%s1038_s7 + $0xe8] sm:$0xff] }
  0x19   : > { %568 = vmatpush.bf16.msra.mxu3 %v876_v4  ;;  %v849_v13 = vld [vmem:[%s1038_s7 + $0x20] sm:$0xff]  ;;  %v848_v18 = vld [vmem:[%s1038_s7 + $0x18] sm:$0xff]  ;;  %v847_v22 = vld [vmem:[%s1038_s7 + $0x10] sm:$0xff] }
  0x1a   : > { %530 = vmatpush.bf16.msra.mxu0 %v851_v5  ;;  %v857_v14 = vld [vmem:[%s1038_s7 + $0x60] sm:$0xff]  ;;  %v856_v19 = vld [vmem:[%s1038_s7 + $0x58] sm:$0xff]  ;;  %v855_v23 = vld [vmem:[%s1038_s7 + $0x50] sm:$0xff] }
  0x1b   : > { %543 = vmatpush.bf16.msra.mxu1 %v859_v6  ;;  %v262_v15 = vld [vmem:[%s247_s27] sm:$0xf]  ;;  %v864_v20 = vld [vmem:[%s1038_s7 + $0x98] sm:$0xff]  ;;  %v863_v24 = vld [vmem:[%s1038_s7 + $0x90] sm:$0xff] }
  0x1c   : > { %556 = vmatpush.bf16.msra.mxu2 %v867_v7  ;;  %v865_v16 = vld [vmem:[%s1038_s7 + $0xa0] sm:$0xff]  ;;  %328 = vst [vmem:[#allocation1] ss:$9 sm:$0xff] %v262_v15  ;;  %v872_v21 = vld [vmem:[%s1038_s7 + $0xd8] sm:$0xff]  ;;  %v871_v25 = vld [vmem:[%s1038_s7 + $0xd0] sm:$0xff] }
  0x1d   : > { %569 = vmatpush.bf16.msra.mxu3 %v875_v8  ;;  %v873_v17 = vld [vmem:[%s1038_s7 + $0xe0] sm:$0xff]  ;;  %v846_v26 = vld [vmem:[%s1038_s7 + $0x8] sm:$0xff] }
  0x1e   : > { %531 = vmatpush.bf16.msra.mxu0 %v850_v9  ;;  %v854_v27 = vld [vmem:[%s1038_s7 + $0x48] sm:$0xff]  ;;  %v845_v30 = vld [vmem:[%s1038_s7] sm:$0xff] }
  0x1f   : > { %544 = vmatpush.bf16.msra.mxu1 %v858_v10  ;;  %v862_v28 = vld [vmem:[%s1038_s7 + $0x88] sm:$0xff]  ;;  %v853_v31 = vld [vmem:[%s1038_s7 + $0x40] sm:$0xff] }
  0x20   : > { %557 = vmatpush.bf16.msra.mxu2 %v866_v11  ;;  %v870_v29 = vld [vmem:[%s1038_s7 + $0xc8] sm:$0xff]  ;;  %v861_v32 = vld [vmem:[%s1038_s7 + $0x80] sm:$0xff] }
  0x21   : > { %570 = vmatpush.bf16.msra.mxu3 %v874_v12  ;;  %v869_v33 = vld [vmem:[%s1038_s7 + $0xc0] sm:$0xff]  ;;  %v261_v46 = vld [vmem:[#allocation2] sm:$0x3] }
  0x22   : > { %532 = vmatpush.bf16.msra.mxu0 %v849_v13 }
  0x23   : > { %545 = vmatpush.bf16.msra.mxu1 %v857_v14  ;;  %v329_v34 = vld [vmem:[#allocation1] sm:$0xff]  ;;  %v330_v35 = vld [vmem:[#allocation1 + $0x9] sm:$0xff]  ;;  %v331_v36 = vld [vmem:[#allocation1 + $0x12] sm:$0xff] }
  0x24   : > { %558 = vmatpush.bf16.msra.mxu2 %v865_v16  ;;  %v332_v37 = vld [vmem:[#allocation1 + $0x1b] sm:$0xff] }
  0x25   : > { %571 = vmatpush.bf16.msra.mxu3 %v873_v17 }
  0x26   : > { %533 = vmatpush.bf16.msra.mxu0 %v848_v18 }
  0x27   : > { %546 = vmatpush.bf16.msra.mxu1 %v856_v19 }
  0x28   : > { %559 = vmatpush.bf16.msra.mxu2 %v864_v20 }
  0x29   : > { %572 = vmatpush.bf16.msra.mxu3 %v872_v21 }
  0x2a   : > { %534 = vmatpush.bf16.msra.mxu0 %v847_v22 }
  0x2b   : > { %547 = vmatpush.bf16.msra.mxu1 %v855_v23 }
  0x2c   : > { %560 = vmatpush.bf16.msra.mxu2 %v863_v24 }
  0x2d   : > { %573 = vmatpush.bf16.msra.mxu3 %v871_v25 }
  0x2e   : > { %535 = vmatpush.bf16.msra.mxu0 %v846_v26 }
  0x2f   : > { %548 = vmatpush.bf16.msra.mxu1 %v854_v27 }
  0x30   : > { %561 = vmatpush.bf16.msra.mxu2 %v862_v28 }
  0x31   : > { %574 = vmatpush.bf16.msra.mxu3 %v870_v29 }
  0x32   : > { %536 = vmatpush.bf16.msra.mxu0 %v845_v30 }
  0x33   : > { %549 = vmatpush.bf16.msra.mxu1 %v853_v31 }
  0x34   : > { %562 = vmatpush.bf16.msra.mxu2 %v861_v32 }
  0x35   : > { %575 = vmatpush.bf16.msra.mxu3 %v869_v33  ;;  %537 = vmatmul.bf16.vlgmr.msra.gmra.mxu0 %v329_v34 }
  0x36   : > { %550 = vmatmul.bf16.vlgmr.msra.gmra.mxu1 %v330_v35 }
  0x37   : > { %563 = vmatmul.bf16.vlgmr.msra.gmra.mxu2 %v331_v36 }
  0x38   : > { %576 = vmatmul.bf16.vlgmr.msra.gmra.mxu3 %v332_v37 }
  0xb2   : > { %v538_v38 = vpop.f32.mrf.mxu0 }
  0xb3   : > { %v551_v39 = vpop.f32.mrf.mxu1 }
  0xb4   : > { %v552_v40 = vadd.f32 %v551_v39, %v538_v38 }
  0xba   : > { %v564_v41 = vpop.f32.mrf.mxu2  ;;  %v540_v44 = vpop.f32.mrf.mxu0 }
  0xbb   : > { %v577_v42 = vpop.f32.mrf.mxu3  ;;  %v565_v43 = vadd.f32 %v564_v41, %v552_v40  ;;  %v553_v45 = vpop.f32.mrf.mxu1 }
  0xbd   : > { %v578_v47 = vadd.f32 %v577_v42, %v565_v43 }
  0xbf   : > { %v581_v48 = vadd.f32 %v578_v47, %v261_v46  ;;  %587 = sbr.rel (%p838_p6) target bundleno = 432 (0x1b0), region = 44 }
  0xc1   : > { %583 = vst.msk [vmem:[#allocation2] sm:$0x3] %vm582_vm1, %v581_v48 }
  0xc2   : > { %v566_v49 = vpop.f32.mrf.mxu2 }
  0xc3   : > { %v579_v50 = vpop.f32.mrf.mxu3 }
  0xc4   : > { %v603_v51 = vld [vmem:[%s1113_s3] sm:$0x3]  ;;  %vm594_vm2 = vcmask 254976  }
  0xc5   : > { %605 = vrot.lane.b32.xlu0 %v603_v51, %s978_s12  ;;  %v902_v52 = vld [vmem:[%s1112_s2] ss:$0 sm:$0xff] }
  0xc8   : > { %v588_v53 = vld [vmem:[#allocation2] sm:$0x3] }
  0xc9   : > { %v593_v54 = vadd.f32 %v902_v52, %v588_v53 }
  0xcb   : > { %597 = vrot.lane.b32.xlu1 %v593_v54, %s979_s15  ;;  %595 = vst.msk [vmem:[#allocation3] sm:$0x3] %vm594_vm2, %v593_v54  ;;  %v601_v55 = vmul.f32 1.442695, %v593_v54 }
  0xcd   : > { %903 = vpow2.f32 %v601_v55 }
  0xd3   : > { %v904_v56 = vpop.eup %903 }
 0x137   : > { %v606_v57 = vpop.permute.xlu0 %605 }
 0x138   : > { %v608_v58 = vmul.f32 %v904_v56, %v606_v57 }
 0x13a   : > { %610 = vrot.lane.b32.xlu0 %v608_v58, %s979_s15 }
 0x13d   : > { %v598_v59 = vpop.permute.xlu1 %597 }
 0x13e   : > { %600 = vst.msk [vmem:[#allocation5] sm:$0x3] %vm594_vm2, %v598_v59 }
 0x1ac   : > { %v611_v60 = vpop.permute.xlu0 %610 }
 0x1ad   : > { %v613_v61 = vadd.f32 %v611_v60, %v593_v54 }
 0x1af   : > { %614 = vst.msk [vmem:[%s1116_s6] sm:$0x3] %vm594_vm2, %v613_v61 }
 0x1b0 PF: > { %p885_p7 = scmp.eq.s32.totalorder %s1023_s22, 3  ;;  %s980_s18 = smov [#allocation3]  }
 0x1b1   : > { %s621_s19 = sshll.u32 %s980_s18, 4  ;;  %s623_s24 = sshll.u32 %s1114_s4, 4  ;;  %s622_s19 = int_to_ptr.vmem [resolvable:$true] %s621_s19  ;;  %s624_s24 = int_to_ptr.hbm [resolvable:$true] %s623_s24 }
 0x1b2   : > { %878 = dma.vmem_to_hbm [thread:$0]  (%p885_p7), %s622_s19, 32, %s624_s24, [#allocation4]  }
 0x1b3   : > { %s635_s27 = sshll.u32 %s1115_s5, 4  ;;  %s981_s28 = smov [#allocation5]   ;;  %s636_s27 = int_to_ptr.hbm [resolvable:$true] %s635_s27 }
 0x1b4   : > { %s633_s29 = sshll.u32 %s981_s28, 4  ;;  %s634_s29 = int_to_ptr.vmem [resolvable:$true] %s633_s29 }
 0x1b5   : > { %880 = dma.vmem_to_hbm [thread:$0]  (%p885_p7), %s634_s29, 32, %s636_s27, [#allocation6]  }
 0x1b6   : > { %966 = dma.done.wait (%p885_p7), [#allocation4], 32  }
 0x1b7   : > { %968 = vsyncadd (%p885_p7), [#allocation4], 4294967264 }
 0x1b8   : > { %970 = dma.done.wait (%p885_p7), [#allocation6], 32  }
 0x1b9   : > { %972 = vsyncadd (%p885_p7), [#allocation6], 4294967264 }
 0x1ba PF: > { %s19_s21 = sadd.s32 1, %s975_s21  }
 0x1bb   : > { %p16_p8 = scmp.ge.s32.totalorder %s19_s21, 6  }
 0x1bd   :  { %18 = sbr.rel (!%p16_p8) target bundleno = 2 (0x2), region = 90 }
 0x1c2   :  { %660 = vsyncpa [#allocation4], 1 }
 0x1c3   :  { %662 = vsyncpa [#allocation4 + $0x1], 1 }
 0x1c4   :  { %663 = vsyncpa [#allocation6], 1 }

// kernel: vae_forward.7
= control target key start
LH: loop header
LB: loop body
LE: loop exit
PB: predicated region body
PF: predicated region fallthrough
CT: control target
= control target key end

     0   :  { %s838_s12 = smov 0   ;;  %s950_s0 = inlined_call_operand.vmem [shape: bf16[2,18,144], index: 0, kind: input, shape index: {}]   ;;  %s951_s1 = inlined_call_operand.vmem [shape: bf16[3,144,128], index: 1, kind: input, shape index: {}]   ;;  %s952_s2 = inlined_call_operand.vmem [shape: f32[1,128], index: 2, kind: input, shape index: {}]   ;;  %s953_s3 = inlined_call_operand.vmem [shape: f32[2,16,128], index: 3, kind: output, shape index: {}]  }
   0x1 LB: > { %s601_s13 = sadd.s32 4294967295, %s816_s12   ;;  %p605_p0 = scmp.ge.s32.totalorder %s816_s12, 1  ;;  %s816_s12 = sphi %s838_s12, %s13_s12  }
   0x2   : > { %p137_p1 = scmp.lt.s32.totalorder %s816_s12, 3 }
   0x4   : > { %p138_p2 = pnand %p605_p0, %p137_p1 }
   0x5   : > { %p161_p3 = scmp.lt.s32.totalorder (!%p138_p2), %s601_s13, 1 }
   0x6   : > { %141 = sbr.rel (%p138_p2) target bundleno = 200 (0xc8), region = 32 }
   0xb   : > { %v785_v0 = vld [vmem:[%s951_s1 + $0x80] sm:$0xff]  ;;  %v786_v1 = vld [vmem:[%s951_s1 + $0x88] sm:$0xff]  ;;  %v776_v2 = vld [vmem:[%s951_s1 + $0x38] sm:$0xff]  ;;  %s955_s13 = smov (!%p161_p3, %s601_s13), 1  ;;  %vm305_vm0 = vcmask 130048   ;;  %vm441_vm2 = vcmask 1046528  }
   0xc   : > { %v794_v3 = vld [vmem:[%s951_s1 + $0xc8] sm:$0xff]  ;;  %309 = vmatpush.bf16.msra.mxu0 %v785_v0  ;;  %330 = vmatpush.bf16.msra.mxu1 %v786_v1  ;;  %v784_v4 = vld [vmem:[%s951_s1 + $0x78] sm:$0xff]  ;;  %v777_v5 = vld [vmem:[%s951_s1 + $0x40] sm:$0xff]  ;;  %s796_s30 = smul.u32 24, %s955_s13  ;;  %vm225_vm1 = vsmask.f32 7424 }
   0xd   : > { %394 = vmatpush.bf16.msra.mxu2 %v776_v2  ;;  %v775_v6 = vld [vmem:[%s951_s1 + $0x30] sm:$0xff]  ;;  %v793_v7 = vld [vmem:[%s951_s1 + $0xc0] sm:$0xff]  ;;  %415 = vmatpush.bf16.msra.mxu3 %v777_v5  ;;  %v774_v10 = vld [vmem:[%s951_s1 + $0x28] sm:$0xff]  ;;  %s766_s24 = sshll.u32 %s955_s13, 4 }
   0xe   : > { %v795_v8 = vld [vmem:[%s951_s1 + $0xd0] sm:$0xff]  ;;  %s165_s14 = scalar_lea.vmem %s950_s0, %s796_s30  ;;  %v792_v11 = vld [vmem:[%s951_s1 + $0xb8] sm:$0xff]  ;;  %v782_v17 = vld [vmem:[%s951_s1 + $0x68] sm:$0xff]  ;;  %s170_s27 = scalar_lea.vmem %s953_s3, %s766_s24 }
   0xf   : > { %v783_v9 = vld [vmem:[%s951_s1 + $0x70] sm:$0xff]  ;;  %v767_v12 = vld [vmem:[%s165_s14 + $0x4] sm:$0xf]  ;;  %v631_v13 = vld [vmem:[%s165_s14 + $0x8] sm:$0xf0] }
  0x10   : > { %506 = vmatpush.bf16.msrb.mxu1 %v794_v3  ;;  %310 = vmatpush.bf16.msra.mxu0 %v784_v4  ;;  %v174_v14 = vld [vmem:[%s165_s14 + $0x10] sm:$0x11]  ;;  %v634_v15 = vor.u32 %v767_v12, %v631_v13  ;;  %v773_v18 = vld [vmem:[%s951_s1 + $0x20] sm:$0xff]  ;;  %v768_v24 = vld [vmem:[%s165_s14 + $0x4] sm:$0xf0] }
  0x11   : > { %395 = vmatpush.bf16.msra.mxu2 %v775_v6  ;;  %v220_v16 = vunpack.c.h.b16 %v174_v14  ;;  %527 = vmatpush.bf16.msrb.mxu3 %v795_v8  ;;  %v791_v19 = vld [vmem:[%s951_s1 + $0xb0] sm:$0xff]  ;;  %v629_v23 = vld [vmem:[%s165_s14] sm:$0xf]  ;;  %v219_v30 = vunpack.c.l.b16 %v174_v14  ;;  %v772_v32 = vld [vmem:[%s951_s1 + $0x18] sm:$0xff] }
  0x12   : > { %708 = vmatmul.msk.bf16.vlgmr.msra.gmra.mxu3 %vm305_vm0, %v634_v15  ;;  %v239_v21 = vshrl.u32 %v634_v15, 16  ;;  %v241_v22 = vshll.u32 %v634_v15, 16  ;;  %v781_v29 = vld [vmem:[%s951_s1 + $0x60] sm:$0xff]  ;;  %v630_v31 = vor.u32 %v768_v24, %v629_v23  ;;  %v790_v33 = vld [vmem:[%s951_s1 + $0xa8] sm:$0xff]  ;;  %v780_v35 = vld [vmem:[%s951_s1 + $0x58] sm:$0xff]  ;;  %v445_v40 = vrot.slane %v634_v15, 1 }
  0x13   : > { %v224_v20 = vpack.c.b16 %v220_v16, %v220_v16  ;;  %v223_v36 = vpack.c.b16 %v219_v30, %v219_v30  ;;  %v771_v38 = vld [vmem:[%s951_s1 + $0x10] sm:$0xff]  ;;  %v789_v39 = vld [vmem:[%s951_s1 + $0xa0] sm:$0xff]  ;;  %v770_v46 = vld [vmem:[%s951_s1 + $0x8] sm:$0xff] }
  0x14   : > { %507 = vmatpush.bf16.msrb.mxu1 %v793_v7  ;;  %311 = vmatpush.bf16.msra.mxu0 %v783_v9  ;;  %v243_v25 = vrot.slane %v241_v22, 1  ;;  %v229_v37 = vshll.u32 %v630_v31, 16  ;;  %v779_v42 = vld [vmem:[%s951_s1 + $0x50] sm:$0xff]  ;;  %v227_v43 = vshrl.u32 %v630_v31, 16  ;;  %v788_v47 = vld [vmem:[%s951_s1 + $0x98] sm:$0xff]  ;;  %v778_v49 = vld [vmem:[%s951_s1 + $0x48] sm:$0xff] }
  0x15   : > { %396 = vmatpush.bf16.msra.mxu2 %v774_v10  ;;  %v246_v26 = vshll.u32 %v224_v20, 16  ;;  %v446_v41 = vrot.slane %v224_v20, 1  ;;  %v234_v45 = vshll.u32 %v223_v36, 16  ;;  %v769_v52 = vld [vmem:[%s951_s1] sm:$0xff]  ;;  %v787_v53 = vld [vmem:[%s951_s1 + $0x90] sm:$0xff]  ;;  %v442_v54 = vrot.slane %v630_v31, 1 }
  0x16   : > { %v244_v27 = vor.u32 %v243_v25, %v239_v21  ;;  %v231_v44 = vrot.slane %v229_v37, 1  ;;  %v443_v55 = vrot.slane %v223_v36, 1  ;;  %v805_v6 = vld [vmem:[%s952_s2] ss:$0 sm:$0xff] }
  0x17   : > { %v248_v28 = vrot.slane %v246_v26, 1  ;;  %v447_v48 = vsel %vm441_vm2, %v445_v40, %v446_v41  ;;  %v236_v51 = vrot.slane %v234_v45, 1 }
  0x18   : > { %508 = vmatpush.bf16.msrb.mxu1 %v792_v11  ;;  %312 = vmatpush.bf16.msra.mxu0 %v782_v17  ;;  %v232_v50 = vor.u32 %v231_v44, %v227_v43  ;;  %v444_v57 = vsel %vm441_vm2, %v442_v54, %v443_v55 }
  0x19   : > { %397 = vmatpush.bf16.msra.mxu2 %v773_v18  ;;  %v249_v34 = vsel %vm225_vm1, %v244_v27, %v248_v28 }
  0x1a   : > { %671 = vmatmul.msk.bf16.vlgmr.msra.gmra.mxu1 %vm305_vm0, %v249_v34  ;;  %v237_v56 = vsel %vm225_vm1, %v232_v50, %v236_v51 }
  0x1c   : > { %509 = vmatpush.bf16.msrb.mxu1 %v791_v19  ;;  %313 = vmatpush.bf16.msra.mxu0 %v781_v29 }
  0x1d   : > { %398 = vmatpush.bf16.msra.mxu2 %v772_v32 }
  0x20   : > { %510 = vmatpush.bf16.msrb.mxu1 %v790_v33  ;;  %314 = vmatpush.bf16.msra.mxu0 %v780_v35 }
  0x21   : > { %399 = vmatpush.bf16.msra.mxu2 %v771_v38 }
  0x22   : > { %763 = vmatmul.msk.bf16.vlgmr.msrb.gmra.mxu3 %vm305_vm0, %v447_v48 }
  0x24   : > { %511 = vmatpush.bf16.msrb.mxu1 %v789_v39  ;;  %315 = vmatpush.bf16.msra.mxu0 %v779_v42 }
  0x25   : > { %400 = vmatpush.bf16.msra.mxu2 %v770_v46 }
  0x28   : > { %512 = vmatpush.bf16.msrb.mxu1 %v788_v47  ;;  %316 = vmatpush.bf16.msra.mxu0 %v778_v49 }
  0x29   : > { %401 = vmatpush.bf16.msra.mxu2 %v769_v52 }
  0x2b   : > { %317 = vmatmul.bf16.vlgmr.msra.gmra.mxu0 %v237_v56 }
  0x2c   : > { %513 = vmatpush.bf16.msrb.mxu1 %v787_v53  ;;  %402 = vmatmul.bf16.vlgmr.msra.gmra.mxu2 %v630_v31 }
  0x2f   : > { %514 = vmatmul.bf16.vlgmr.msrb.gmra.mxu1 %v444_v57 }
  0x95   : > { %v417_v58 = vpop.f32.mrf.mxu3 }
  0x97   : > { %v332_v59 = vpop.f32.mrf.mxu1 }
  0x9d   : > { %v419_v60 = vpop.f32.mrf.mxu3 }
  0x9f   : > { %v334_v61 = vpop.f32.mrf.mxu1 }
  0xa5   : > { %v529_v63 = vpop.f32.mrf.mxu3 }
  0xa8   : > { %v318_v62 = vpop.f32.mrf.mxu0 }
  0xa9   : > { %v333_v1 = vadd.f32 %v332_v59, %v318_v62 }
  0xac   : > { %v515_v0 = vpop.f32.mrf.mxu1 }
  0xad   : > { %v530_v3 = vadd.f32 %v529_v63, %v515_v0  ;;  %v531_v11 = vpop.f32.mrf.mxu3 }
  0xaf   : > { %v403_v2 = vpop.f32.mrf.mxu2 }
  0xb0   : > { %v404_v4 = vadd.f32 %v403_v2, %v333_v1  ;;  %v320_v7 = vpop.f32.mrf.mxu0 }
  0xb1   : > { %v335_v10 = vadd.f32 %v334_v61, %v320_v7 }
  0xb2   : > { %v418_v5 = vadd.f32 %v417_v58, %v404_v4 }
  0xb4   : > { %v534_v8 = vadd.f32 %v530_v3, %v418_v5  ;;  %v517_v12 = vpop.f32.mrf.mxu1 }
  0xb5   : > { %v532_v15 = vadd.f32 %v531_v11, %v517_v12 }
  0xb6   : > { %v540_v9 = vadd.f32 %v805_v6, %v534_v8 }
  0xb7   : > { %v405_v13 = vpop.f32.mrf.mxu2 }
  0xb8   : > { %806 = vtanh.f32 %v540_v9  ;;  %v406_v14 = vadd.f32 %v405_v13, %v335_v10 }
  0xba   : > { %v420_v16 = vadd.f32 %v419_v60, %v406_v14 }
  0xbc   : > { %v535_v17 = vadd.f32 %v532_v15, %v420_v16 }
  0xbe   : > { %v807_v18 = vpop.eup %806  ;;  %v541_v19 = vadd.f32 %v805_v6, %v535_v17 }
  0xbf   : > { %544 = vst [vmem:[%s170_s27] sm:$0xff] %v807_v18 }
  0xc0   : > { %808 = vtanh.f32 %v541_v19 }
  0xc6   : > { %v809_v20 = vpop.eup %808 }
  0xc7   : > { %545 = vst [vmem:[%s170_s27 + $0x8] sm:$0xff] %v809_v20 }
  0xc8 PF: > { %s13_s12 = sadd.s32 1, %s816_s12  }
  0xc9   : > { %p10_p4 = scmp.ge.s32.totalorder %s13_s12, 4  }
  0xcb   :  { %12 = sbr.rel (!%p10_p4) target bundleno = 1 (0x1), region = 64 }

</bundles_post_ra>
